<compile_context>
chip_gen: v5e
topology: v5e:2x2
jax: 0.10.0
libtpu: 0.0.40
codegen_flags: <defaults>
</compile_context>

<pallas_src>
import jax
import jax.numpy as jnp
from jax import lax
from jax.experimental import pallas as pl
from jax.experimental.pallas import tpu as pltpu


def _make_lightconv_kernel(Bt, H, Hrp, W, C1, C2, K):
    WC2 = W * C2
    Kin = W * C1 + 1

    def kernel(xin_ref, wblk_ref, wdt_ref, b2_ref, o_ref):
        # xin_ref : (Bt, Hrp, W*C1+1)  row-padded NHWC activations + ones col
        # wblk_ref: (W*C1+1, K*W*C2)   dx-shifted block-diag folded 1x1 weight
        #                              (+ per-dx BN1 bias row)
        # wdt_ref : (K*K, W*C2)        folded depthwise weights, tiled over W
        # b2_ref  : (1, W*C2)          folded BN2 bias, tiled over W
        # o_ref   : (Bt, H, W*C2)      lane-dense output (W*C2 = 128 here)

        # One batched MXU matmul produces, for every image in the tile and every
        # horizontal tap dx, the zero-padded BN1(conv1x1(x)) map.  Images stack
        # along M (Hrp % 8 == 0 -> reshape is layout-free); tap dx lives at lane
        # offset dx*W*C2 (a multiple of 128 -> no cross-lane shuffles).
        xm = xin_ref[...].reshape(Bt * Hrp, Kin)
        zp = jnp.dot(xm, wblk_ref[...],
                     preferred_element_type=jnp.float32)    # (Bt*Hrp, K*W*C2)
        zp = zp.reshape(Bt, Hrp, K * WC2)

        wdt = wdt_ref[...]                                   # (K*K, W*C2) f32
        acc = jnp.zeros((Bt, H, WC2), jnp.float32)
        for dy in range(K):                                  # 9 static taps
            for dx in range(K):
                acc = acc + (zp[:, dy:dy + H, dx * WC2:(dx + 1) * WC2]
                             * wdt[dy * K + dx])

        y = jnp.maximum(acc + b2_ref[...], 0.0)              # BN2 bias + ReLU
        o_ref[...] = y.astype(o_ref.dtype)

    return kernel


def prepare_lightconv_operands(w1_f, b1_f, wd_f, b2_f, k, W):
    """Build the kernel-side constant operands from BN-folded weights.

    These depend only on the (folded) parameters -- build ONCE and reuse across
    forward calls (keeps the kron/tile/scatter work out of the hot path).

    w1_f: (C2, C1) folded 1x1 weight      b1_f: (C2,) folded BN1 bias
    wd_f: (C2, K, K) folded dw weight     b2_f: (C2,) folded BN2 bias
    """
    f32 = jnp.float32
    C2, C1 = w1_f.shape
    K = k
    pad = K // 2

    w1_io = jnp.transpose(w1_f, (1, 0)).astype(f32)          # (C1, C2)
    blocks, bias_cols = [], []
    for dx in range(K):
        # S[w_in, w_out] = 1 iff w_in == w_out + dx - pad (in range): output
        # column w_out of horizontal tap dx reads input column w_out + dx - pad.
        S = jnp.eye(W, dtype=f32, k=pad - dx)                # (W, W)
        blocks.append(jnp.kron(S, w1_io))                    # (W*C1, W*C2)
        valid = (jnp.sum(S, axis=0) > 0).astype(f32)         # (W,) 1=in range
        bias_cols.append((valid[:, None]
                          * b1_f[None, :].astype(f32)).reshape(-1))
    wblk = jnp.concatenate(
        [jnp.concatenate(blocks, axis=1),
         jnp.concatenate(bias_cols)[None, :]], axis=0)       # (W*C1+1, K*W*C2)

    wdt = jnp.transpose(wd_f, (1, 2, 0)).reshape(K * K, C2)
    wdt = jnp.tile(wdt, (1, W)).astype(f32)                  # (K*K, W*C2)
    b2t = jnp.tile(b2_f, W).reshape(1, W * C2).astype(f32)   # (1, W*C2)
    return wblk, wdt, b2t


def lightconv_forward(x_nchw, wblk, wdt, b2t, k, *,
                      batch_tile=None, mxu_dtype=jnp.float32):
    """LightConv forward (BN folded).  x_nchw: (B, C1, H, W) -> (B, C2, H, W)."""
    B, C1, H, W = x_nchw.shape
    K = k
    pad = K // 2
    KK, WC2 = wdt.shape
    C2 = WC2 // W
    Kin = W * C1 + 1

    # Rows per image padded to a multiple of 8 so stacking images along the
    # matmul M dimension is layout-free (H + 2*pad = 18 -> 24 here).
    Hrp = -(-(H + 2 * pad) // 8) * 8

    if batch_tile is None:
        batch_tile = max(1, min(B, 128 // Hrp))   # aim for M ~ 128 per step
    Bt = batch_tile
    Bp = -(-B // Bt) * Bt                          # pad batch to multiple of Bt

    # NCHW -> (B, H, W*C1); append ones column (drives the BN1-bias / padding
    # rows of wblk); zero rows at [0, pad) and [pad + H, Hrp).
    xin = jnp.transpose(x_nchw, (0, 2, 3, 1)).reshape(B, H, W * C1)
    xin = jnp.concatenate([xin, jnp.ones((B, H, 1), xin.dtype)], axis=-1)
    xin = jnp.pad(xin, ((0, Bp - B), (pad, Hrp - H - pad), (0, 0)))
    xin = xin.astype(mxu_dtype)                    # bf16 on v6e/v7x: 1/2 DMA,
    wblk_c = wblk.astype(mxu_dtype)                # 2x MXU rate; acc stays f32

    # Honest cost estimate: useful FLOPs only (no block-diag structural zeros).
    flops = 2 * B * H * W * C1 * C2 + 2 * B * H * W * K * K * C2
    bytes_accessed = (xin.size * xin.dtype.itemsize
                      + wblk_c.size * wblk_c.dtype.itemsize
                      + 4 * (wdt.size + b2t.size + Bp * H * WC2))

    out = pl.pallas_call(
        _make_lightconv_kernel(Bt, H, Hrp, W, C1, C2, K),
        out_shape=jax.ShapeDtypeStruct((Bp, H, WC2), jnp.float32),
        grid=(Bp // Bt,),
        in_specs=[
            pl.BlockSpec((Bt, Hrp, Kin), lambda i: (i, 0, 0)),
            # wblk / wdt / b2t are grid-invariant (index_map always block 0):
            # Pallas keeps them resident across grid steps.  (pl.Buffered(1)
            # would also drop their second pipeline buffer; omitted for
            # portability -- the buffers are tiny here.)
            pl.BlockSpec((Kin, K * WC2), lambda i: (0, 0)),
            pl.BlockSpec((KK, WC2), lambda i: (0, 0)),
            pl.BlockSpec((1, WC2), lambda i: (0, 0)),
        ],
        out_specs=pl.BlockSpec((Bt, H, WC2), lambda i: (i, 0, 0)),
        compiler_params=pltpu.CompilerParams(
            dimension_semantics=("parallel",)),
        cost_estimate=pl.CostEstimate(
            flops=flops, transcendentals=0, bytes_accessed=bytes_accessed),
    )(xin, wblk_c, wdt, b2t)

    # Lane-dense (B, H, W*C2) -> NCHW only to match the PyTorch reference layout
    # (a real NHWC pipeline would stay lane-dense end-to-end).
    return jnp.transpose(out[:B].reshape(B, H, W, C2), (0, 3, 1, 2))


def fold_bn_scale(gamma, beta, mean, var, eps):
    """Eval-mode BatchNorm2d -> per-channel (scale, bias)."""
    scale = gamma / jnp.sqrt(var + eps)
    return scale, beta - mean * scale


def reference_forward(x, w1_oihw, bn1, wd_oihw, bn2, k):
    """Plain-JAX replica of LightConv.forward (eval-mode BN)."""
    C2 = w1_oihw.shape[0]
    p = k // 2

    def bn(y, prm):
        g, b, m, v, eps = prm
        return ((y - m[None, :, None, None])
                / jnp.sqrt(v[None, :, None, None] + eps)
                * g[None, :, None, None] + b[None, :, None, None])

    y = lax.conv_general_dilated(x, w1_oihw, (1, 1), [(0, 0), (0, 0)],
                                 dimension_numbers=("NCHW", "OIHW", "NCHW"))
    y = bn(y, bn1)                                  # conv1: act=False -> identity
    y = lax.conv_general_dilated(y, wd_oihw, (1, 1), [(p, p), (p, p)],
                                 dimension_numbers=("NCHW", "OIHW", "NCHW"),
                                 feature_group_count=C2)
    y = bn(y, bn2)
    return jnp.maximum(y, 0.0)                      # LightConv default act = ReLU


if __name__ == "__main__":
    # LightConv(c1=4, c2=8, k=3, act=nn.ReLU()).  W*C2 = 16*8 = 128 -> lane-dense.
    # B=8 with batch_tile=4 -> 2 parallel grid steps (both v7x TCs busy), each
    # step doing one (96, 65) @ (65, 384) MXU matmul for 4 images.
    # TODO(synk): training-mode BN (running-stat updates) is not modeled; this is
    # the standard eval-mode folded-BN forward.
    B, C1, C2, H, W, K = 8, 4, 8, 16, 16, 3
    eps = 1e-5  # nn.BatchNorm2d default

    key = jax.random.PRNGKey(0)
    keys = jax.random.split(key, 11)

    x = jax.random.normal(keys[0], (B, C1, H, W), jnp.float32)

    # conv1: 1x1 (C2,C1,1,1); conv2: depthwise kxk (C2,1,K,K); both bias=False.
    w1 = jax.random.normal(keys[1], (C2, C1, 1, 1), jnp.float32) * 0.3
    wd = jax.random.normal(keys[2], (C2, 1, K, K), jnp.float32) * 0.3

    bn1 = (1.0 + 0.1 * jax.random.normal(keys[3], (C2,), jnp.float32),   # gamma
           0.1 * jax.random.normal(keys[4], (C2,), jnp.float32),         # beta
           0.1 * jax.random.normal(keys[5], (C2,), jnp.float32),         # mean
           0.5 + jax.random.uniform(keys[6], (C2,), jnp.float32),        # var
           eps)
    bn2 = (1.0 + 0.1 * jax.random.normal(keys[7], (C2,), jnp.float32),
           0.1 * jax.random.normal(keys[8], (C2,), jnp.float32),
           0.1 * jax.random.normal(keys[9], (C2,), jnp.float32),
           0.5 + jax.random.uniform(keys[10], (C2,), jnp.float32),
           eps)

    # Fold eval-mode BN into conv weights/biases (exact equivalence).
    s1, b1_f = fold_bn_scale(*bn1)
    s2, b2_f = fold_bn_scale(*bn2)
    w1_f = w1[:, :, 0, 0] * s1[:, None]            # (C2, C1)
    wd_f = wd[:, 0] * s2[:, None, None]            # (C2, K, K)

    # Built once from the folded weights, reused for every forward call.
    wblk, wdt, b2t = prepare_lightconv_operands(w1_f, b1_f, wd_f, b2_f, K, W)

    ref = reference_forward(x, w1, bn1, wd, bn2, K)
    assert ref.shape == (B, C2, H, W)

    # f32 MXU operands: tight check against the f32 reference.
    out = lightconv_forward(x, wblk, wdt, b2t, K, batch_tile=4)
    out = jax.block_until_ready(out)
    assert out.shape == (B, C2, H, W)
    max_err = float(jnp.max(jnp.abs(out - ref)))
    assert jnp.allclose(out, ref, atol=1e-4, rtol=1e-4), max_err

    # bf16 MXU operands (v6e/v7x production path): f32 accumulation, looser check.
    out_bf16 = lightconv_forward(x, wblk, wdt, b2t, K, batch_tile=4,
                                 mxu_dtype=jnp.bfloat16)
    out_bf16 = jax.block_until_ready(out_bf16)
    max_err_bf16 = float(jnp.max(jnp.abs(out_bf16 - ref)))
    assert jnp.allclose(out_bf16, ref, atol=5e-2, rtol=5e-2), max_err_bf16

    print("KERNEL_OK")
</pallas_src>

<mosaic_0001>
module attributes {stable_mosaic.version = 11 : i64} {
  func.func @kernel(%arg0: i32, %arg1: memref<4x24x65xf32, #tpu.memory_space<vmem>>, %arg2: memref<65x384xf32, #tpu.memory_space<vmem>>, %arg3: memref<9x128xf32, #tpu.memory_space<vmem>>, %arg4: memref<1x128xf32, #tpu.memory_space<vmem>>, %arg5: memref<4x16x128xf32, #tpu.memory_space<vmem>>) attributes {dimension_semantics = [#tpu.dimension_semantics<parallel>], iteration_bounds = array<i64: 2>, scalar_prefetch = 0 : i64, scratch_operands = 0 : i64, tpu.core_type = #tpu.core_type<tc>, window_params = [{transform_indices = @transform_0, window_bounds = array<i64: 4, 24, 65>}, {pipeline_mode = #tpu.pipeline_mode<synchronous>, transform_indices = @transform_1, window_bounds = array<i64: 65, 384>}, {pipeline_mode = #tpu.pipeline_mode<synchronous>, transform_indices = @transform_2, window_bounds = array<i64: 9, 128>}, {pipeline_mode = #tpu.pipeline_mode<synchronous>, transform_indices = @transform_3, window_bounds = array<i64: 1, 128>}, {transform_indices = @transform_4, window_bounds = array<i64: 4, 16, 128>}]} {
    %c0 = arith.constant 0 : index
    %c0_0 = arith.constant 0 : index
    %c0_1 = arith.constant 0 : index
    %0 = vector.load %arg1[%c0, %c0_0, %c0_1] : memref<4x24x65xf32, #tpu.memory_space<vmem>>, vector<4x24x65xf32>
    %1 = vector.shape_cast %0 : vector<4x24x65xf32> to vector<96x65xf32>
    %c0_2 = arith.constant 0 : index
    %c0_3 = arith.constant 0 : index
    %2 = vector.load %arg2[%c0_2, %c0_3] : memref<65x384xf32, #tpu.memory_space<vmem>>, vector<65x384xf32>
    %cst = arith.constant dense<0.000000e+00> : vector<96x384xf32>
    %3 = tpu.matmul %1, %2, %cst {dimension_numbers = #tpu.dot_dimension_numbers<[1], [0], [0], [1], [0, 0, 1, 1], [], []>} : vector<96x65xf32>, vector<65x384xf32>, vector<96x384xf32> -> vector<96x384xf32>
    %4 = vector.shape_cast %3 : vector<96x384xf32> to vector<4x24x384xf32>
    %c0_4 = arith.constant 0 : index
    %c0_5 = arith.constant 0 : index
    %5 = vector.load %arg3[%c0_4, %c0_5] : memref<9x128xf32, #tpu.memory_space<vmem>>, vector<9x128xf32>
    %cst_6 = arith.constant 0.000000e+00 : f32
    %6 = vector.broadcast %cst_6 : f32 to vector<4x16x128xf32>
    %7 = vector.extract_strided_slice %4 {offsets = [0, 0, 0], sizes = [4, 16, 128], strides = [1, 1, 1]} : vector<4x24x384xf32> to vector<4x16x128xf32>
    %8 = vector.extract_strided_slice %5 {offsets = [0, 0], sizes = [1, 128], strides = [1, 1]} : vector<9x128xf32> to vector<1x128xf32>
    %9 = vector.shape_cast %8 : vector<1x128xf32> to vector<128xf32>
    %10 = vector.shape_cast %9 : vector<128xf32> to vector<1x1x128xf32>
    %11 = vector.broadcast %10 : vector<1x1x128xf32> to vector<4x16x128xf32>
    %12 = arith.mulf %7, %11 : vector<4x16x128xf32>
    %13 = arith.addf %6, %12 : vector<4x16x128xf32>
    %14 = vector.extract_strided_slice %4 {offsets = [0, 0, 128], sizes = [4, 16, 128], strides = [1, 1, 1]} : vector<4x24x384xf32> to vector<4x16x128xf32>
    %15 = vector.extract_strided_slice %5 {offsets = [1, 0], sizes = [1, 128], strides = [1, 1]} : vector<9x128xf32> to vector<1x128xf32>
    %16 = vector.shape_cast %15 : vector<1x128xf32> to vector<128xf32>
    %17 = vector.shape_cast %16 : vector<128xf32> to vector<1x1x128xf32>
    %18 = vector.broadcast %17 : vector<1x1x128xf32> to vector<4x16x128xf32>
    %19 = arith.mulf %14, %18 : vector<4x16x128xf32>
    %20 = arith.addf %13, %19 : vector<4x16x128xf32>
    %21 = vector.extract_strided_slice %4 {offsets = [0, 0, 256], sizes = [4, 16, 128], strides = [1, 1, 1]} : vector<4x24x384xf32> to vector<4x16x128xf32>
    %22 = vector.extract_strided_slice %5 {offsets = [2, 0], sizes = [1, 128], strides = [1, 1]} : vector<9x128xf32> to vector<1x128xf32>
    %23 = vector.shape_cast %22 : vector<1x128xf32> to vector<128xf32>
    %24 = vector.shape_cast %23 : vector<128xf32> to vector<1x1x128xf32>
    %25 = vector.broadcast %24 : vector<1x1x128xf32> to vector<4x16x128xf32>
    %26 = arith.mulf %21, %25 : vector<4x16x128xf32>
    %27 = arith.addf %20, %26 : vector<4x16x128xf32>
    %28 = vector.extract_strided_slice %4 {offsets = [0, 1, 0], sizes = [4, 16, 128], strides = [1, 1, 1]} : vector<4x24x384xf32> to vector<4x16x128xf32>
    %29 = vector.extract_strided_slice %5 {offsets = [3, 0], sizes = [1, 128], strides = [1, 1]} : vector<9x128xf32> to vector<1x128xf32>
    %30 = vector.shape_cast %29 : vector<1x128xf32> to vector<128xf32>
    %31 = vector.shape_cast %30 : vector<128xf32> to vector<1x1x128xf32>
    %32 = vector.broadcast %31 : vector<1x1x128xf32> to vector<4x16x128xf32>
    %33 = arith.mulf %28, %32 : vector<4x16x128xf32>
    %34 = arith.addf %27, %33 : vector<4x16x128xf32>
    %35 = vector.extract_strided_slice %4 {offsets = [0, 1, 128], sizes = [4, 16, 128], strides = [1, 1, 1]} : vector<4x24x384xf32> to vector<4x16x128xf32>
    %36 = vector.extract_strided_slice %5 {offsets = [4, 0], sizes = [1, 128], strides = [1, 1]} : vector<9x128xf32> to vector<1x128xf32>
    %37 = vector.shape_cast %36 : vector<1x128xf32> to vector<128xf32>
    %38 = vector.shape_cast %37 : vector<128xf32> to vector<1x1x128xf32>
    %39 = vector.broadcast %38 : vector<1x1x128xf32> to vector<4x16x128xf32>
    %40 = arith.mulf %35, %39 : vector<4x16x128xf32>
    %41 = arith.addf %34, %40 : vector<4x16x128xf32>
    %42 = vector.extract_strided_slice %4 {offsets = [0, 1, 256], sizes = [4, 16, 128], strides = [1, 1, 1]} : vector<4x24x384xf32> to vector<4x16x128xf32>
    %43 = vector.extract_strided_slice %5 {offsets = [5, 0], sizes = [1, 128], strides = [1, 1]} : vector<9x128xf32> to vector<1x128xf32>
    %44 = vector.shape_cast %43 : vector<1x128xf32> to vector<128xf32>
    %45 = vector.shape_cast %44 : vector<128xf32> to vector<1x1x128xf32>
    %46 = vector.broadcast %45 : vector<1x1x128xf32> to vector<4x16x128xf32>
    %47 = arith.mulf %42, %46 : vector<4x16x128xf32>
    %48 = arith.addf %41, %47 : vector<4x16x128xf32>
    %49 = vector.extract_strided_slice %4 {offsets = [0, 2, 0], sizes = [4, 16, 128], strides = [1, 1, 1]} : vector<4x24x384xf32> to vector<4x16x128xf32>
    %50 = vector.extract_strided_slice %5 {offsets = [6, 0], sizes = [1, 128], strides = [1, 1]} : vector<9x128xf32> to vector<1x128xf32>
    %51 = vector.shape_cast %50 : vector<1x128xf32> to vector<128xf32>
    %52 = vector.shape_cast %51 : vector<128xf32> to vector<1x1x128xf32>
    %53 = vector.broadcast %52 : vector<1x1x128xf32> to vector<4x16x128xf32>
    %54 = arith.mulf %49, %53 : vector<4x16x128xf32>
    %55 = arith.addf %48, %54 : vector<4x16x128xf32>
    %56 = vector.extract_strided_slice %4 {offsets = [0, 2, 128], sizes = [4, 16, 128], strides = [1, 1, 1]} : vector<4x24x384xf32> to vector<4x16x128xf32>
    %57 = vector.extract_strided_slice %5 {offsets = [7, 0], sizes = [1, 128], strides = [1, 1]} : vector<9x128xf32> to vector<1x128xf32>
    %58 = vector.shape_cast %57 : vector<1x128xf32> to vector<128xf32>
    %59 = vector.shape_cast %58 : vector<128xf32> to vector<1x1x128xf32>
    %60 = vector.broadcast %59 : vector<1x1x128xf32> to vector<4x16x128xf32>
    %61 = arith.mulf %56, %60 : vector<4x16x128xf32>
    %62 = arith.addf %55, %61 : vector<4x16x128xf32>
    %63 = vector.extract_strided_slice %4 {offsets = [0, 2, 256], sizes = [4, 16, 128], strides = [1, 1, 1]} : vector<4x24x384xf32> to vector<4x16x128xf32>
    %64 = vector.extract_strided_slice %5 {offsets = [8, 0], sizes = [1, 128], strides = [1, 1]} : vector<9x128xf32> to vector<1x128xf32>
    %65 = vector.shape_cast %64 : vector<1x128xf32> to vector<128xf32>
    %66 = vector.shape_cast %65 : vector<128xf32> to vector<1x1x128xf32>
    %67 = vector.broadcast %66 : vector<1x1x128xf32> to vector<4x16x128xf32>
    %68 = arith.mulf %63, %67 : vector<4x16x128xf32>
    %69 = arith.addf %62, %68 : vector<4x16x128xf32>
    %c0_7 = arith.constant 0 : index
    %c0_8 = arith.constant 0 : index
    %70 = vector.load %arg4[%c0_7, %c0_8] : memref<1x128xf32, #tpu.memory_space<vmem>>, vector<1x128xf32>
    %71 = vector.shape_cast %70 : vector<1x128xf32> to vector<1x1x128xf32>
    %72 = vector.broadcast %71 : vector<1x1x128xf32> to vector<4x16x128xf32>
    %73 = arith.addf %69, %72 : vector<4x16x128xf32>
    %cst_9 = arith.constant 0.000000e+00 : f32
    %74 = vector.broadcast %cst_9 : f32 to vector<4x16x128xf32>
    %75 = arith.maximumf %73, %74 : vector<4x16x128xf32>
    %c0_10 = arith.constant 0 : index
    %c0_11 = arith.constant 0 : index
    %c0_12 = arith.constant 0 : index
    %76 = vector.load %arg5[%c0_10, %c0_11, %c0_12] : memref<4x16x128xf32, #tpu.memory_space<vmem>>, vector<4x16x128xf32>
    tpu.vector_store %arg5[%c0_10, %c0_11, %c0_12], %75 {strides = array<i32>} : memref<4x16x128xf32, #tpu.memory_space<vmem>>, vector<4x16x128xf32>,
    return
  }
  func.func @transform_0(%arg0: i32) -> (i32, i32, i32) {
    %c0_i32 = arith.constant 0 : i32
    %c0_i32_0 = arith.constant 0 : i32
    %c0_i32_1 = arith.constant 0 : i32
    return %arg0, %c0_i32, %c0_i32_0 : i32, i32, i32
  }
  func.func @transform_1(%arg0: i32) -> (i32, i32) {
    %c0_i32 = arith.constant 0 : i32
    %c0_i32_0 = arith.constant 0 : i32
    %c0_i32_1 = arith.constant 0 : i32
    return %c0_i32, %c0_i32_0 : i32, i32
  }
  func.func @transform_2(%arg0: i32) -> (i32, i32) {
    %c0_i32 = arith.constant 0 : i32
    %c0_i32_0 = arith.constant 0 : i32
    %c0_i32_1 = arith.constant 0 : i32
    return %c0_i32, %c0_i32_0 : i32, i32
  }
  func.func @transform_3(%arg0: i32) -> (i32, i32) {
    %c0_i32 = arith.constant 0 : i32
    %c0_i32_0 = arith.constant 0 : i32
    %c0_i32_1 = arith.constant 0 : i32
    return %c0_i32, %c0_i32_0 : i32, i32
  }
  func.func @transform_4(%arg0: i32) -> (i32, i32, i32) {
    %c0_i32 = arith.constant 0 : i32
    %c0_i32_0 = arith.constant 0 : i32
    %c0_i32_1 = arith.constant 0 : i32
    return %arg0, %c0_i32, %c0_i32_0 : i32, i32, i32
  }
}

</mosaic_0001>

<bundles_post_ra>
// kernel: tpu_custom_call.1
= control target key start
LH: loop header
LB: loop body
LE: loop exit
PB: predicated region body
PF: predicated region fallthrough
CT: control target
= control target key end

     0   :  { %9 = vsyncpa [#allocation3], 0  ;;  %s1986_s0 = inlined_call_operand.hbm [shape: f32[8,24,65], index: 0, kind: input, shape index: {}]   ;;  %s1987_s1 = inlined_call_operand.hbm [shape: f32[65,384], index: 1, kind: input, shape index: {}]   ;;  %s1988_s2 = inlined_call_operand.hbm [shape: f32[9,128], index: 2, kind: input, shape index: {}]   ;;  %s1989_s3 = inlined_call_operand.vmem [shape: f32[1,128], index: 3, kind: input, shape index: {}]   ;;  %s1990_s4 = inlined_call_operand.hbm [shape: f32[8,16,128], index: 4, kind: output, shape index: {}]  }
   0x1   :  { %11 = vsyncpa [#allocation3 + $0x1], 0 }
   0x2   :  { %12 = vsyncpa [#allocation6], 0 }
   0x3   :  { %13 = vsyncpa [#allocation4], 0 }
   0x4   :  { %15 = vsyncpa [#allocation4 + $0x1], 0  ;;  %s1416_s15 = smov 0   ;;  %s1418_s16 = smov 0  }
   0x5   :  { %s1420_s17 = smov 0   ;;  %s1422_s18 = smov 0  }
   0x6 LB: > { %s1437_s19 = sadd.s32 4294967295, %s1381_s18   ;;  %s1057_s20 = sadd.s32 4294967294, %s1381_s18   ;;  %s1381_s18 = sphi %s1422_s18, %s2004_s18   ;;  %s1377_s17 = sphi %s1420_s17, %s2003_s17   ;;  %s1373_s16 = sphi %s1418_s16, %s2002_s16   ;;  %s1369_s15 = sphi %s1416_s15, %s2001_s15  }
   0x7   : > { %p41_p0 = scmp.ne.s32.totalorder %s1373_s16, %s1369_s15  ;;  %p42_p1 = scmp.eq.s32.totalorder %s1437_s19, 0 }
   0x8   : > { %p128_p2 = scmp.eq.s32.totalorder %s1437_s19, 1  ;;  %p134_p3 = scmp.eq.s32.totalorder %s1057_s20, 1 }
   0x9   : > { %p1446_p4 = por %p42_p1, %p41_p0  ;;  %p1058_p5 = scmp.ge.s32.totalorder %s1381_s18, 1 }
   0xa   : > { %p1451_p6 = por %p134_p3, %p41_p0  ;;  %p141_p7 = scmp.lt.s32.totalorder %s1381_s18, 3 }
   0xb   : > { %s152_s25 = sshll.u32 %s1987_s1, 4  ;;  %s1383_s27 = smov [#allocation5]   ;;  %s153_s25 = int_to_ptr.hbm [resolvable:$true] %s152_s25 }
   0xc   : > { %p1459_p8 = pnand %p1058_p5, %p141_p7  ;;  %s154_s28 = sshll.u32 %s1383_s27, 4  ;;  %s155_s28 = int_to_ptr.vmem [resolvable:$true] %s154_s28 }
   0xd   : > { %s166_s5 = sshll.u32 %s1988_s2, 4  ;;  %s1384_s6 = smov 384   ;;  %s167_s5 = int_to_ptr.hbm [resolvable:$true] %s166_s5 }
   0xe   : > { %p1158_p9 = pneg %p1459_p8  ;;  %s1385_s7 = smov 24  }
   0xf   : > { %s1386_s8 = smov [#allocation7]   ;;  %s1991_s10 = smov 128  }
  0x10   : > { %p1159_p10 = pnand %p1158_p9, %p42_p1  ;;  %s168_s9 = sshll.u32 %s1386_s8, 4  ;;  %s169_s9 = int_to_ptr.vmem [resolvable:$true] %s168_s9 }
  0x11   : > { %s1992_s11 = smov 8   ;;  %s1475_s12 = sadd.s32 1, %s1381_s18  }
  0x12   : > { %1161 = dma.hbm_to_vmem [thread:$0]  (!%p1159_p10), %s153_s25, 3456, %s155_s28, [#allocation6], %s1384_s6, %s1384_s6, %s1385_s7  }
  0x13   : > { %1164 = dma.hbm_to_vmem [thread:$0]  (!%p1159_p10), %s167_s5, 256, %s169_s9, [#allocation6], %s1991_s10, %s1991_s10, %s1992_s11  }
  0x14   : > { %s25_s13 = ssub.s32 %s1381_s18, %s1475_s12  ;;  %s28_s14 = sadd.s32 1, %s1377_s17 }
  0x15   : > { %p26_p12 = scmp.eq.s32.totalorder %s25_s13, 0  ;;  %p35_p13 = scmp.ne.s32.totalorder %s1377_s17, %s1373_s16 }
  0x16   : > { %p36_p0 = scmp.eq.s32.totalorder %s1381_s18, 0  ;;  %p1175_p7 = scmp.lt.s32.totalorder %s1381_s18, 2 }
  0x17   : > { %s1484_s20 = scalar_select %p26_p12, %s1377_s17, %s28_s14  }
  0x18   : > { %p37_p3 = por %p36_p0, %p35_p13  ;;  %p1488_p5 = por %p128_p2, %p35_p13 }
  0x19   : > { %s185_s24 = sand.u32 1, %s1377_s17   ;;  %s1144_s27 = smul.u32 96, %s1381_s18 }
  0x1a   : > { %s1143_s25 = smul.u32 96, %s185_s24  ;;  %p1495_p9 = pnand %p1175_p7, %p37_p3 }
  0x1b   : > { %s195_s5 = scalar_lea.hbm %s1986_s0, %s1144_s27  ;;  %s186_s9 = scalar_lea.sflag [#allocation3], %s185_s24 }
  0x1c   : > { %s189_s6 = scalar_lea.vmem [#allocation2], %s1143_s25  ;;  %s196_s8 = sshll.u32 %s195_s5, 4  ;;  %s197_s8 = int_to_ptr.hbm [resolvable:$true] %s196_s8 }
  0x1d   : > { %s198_s7 = sshll.u32 %s189_s6, 4  ;;  %s1281_s13 = sshra.s32 %s197_s8, 4  ;;  %s199_s7 = int_to_ptr.vmem [resolvable:$true] %s198_s7  ;;  %s1282_s13 = int_to_ptr.hbm [resolvable:$true] %s1281_s13 }
  0x1e   : > { %s1283_s14 = scalar_lea.hbm %s1282_s13, 96  ;;  %p1285_p10 = pneg %p1495_p9 }
  0x1f   : > { %p1284_p2 = scmp.ne.s32.totalorder %s1282_s13, %s1283_s14  ;;  %s1288_s29 = scalar_lea.hbm %s1986_s0, 192 }
  0x20   : > { %p1289_p0 = scmp.lt.s32.totalorder %s1282_s13, %s1986_s0  ;;  %p1290_p3 = scmp.lt.s32.totalorder %s1288_s29, %s1283_s14 }
  0x21   : > { %p1286_p12 = pnand %p1285_p10, %p1284_p2 }
  0x22   : > { %p1291_p7 = por %p1290_p3, %p1289_p0 }
  0x23   : > { %p1287_p13 = pneg %p1286_p12 }
  0x25   : > { %p1292_p11 = pnand %p1291_p7, %p1287_p13 }
  0x27   : > { %1295 = shalt.err (!%p1292_p11)
}
  0x28   : > { %s1998_s24 = smov 8   ;;  %s1999_s25 = smov 128  }
  0x29   : > { %1168 = dma.hbm_to_vmem [thread:$0]  (!%p1495_p9), %s197_s8, 1536, %s199_s7, %s186_s9, %s1999_s25, %s1999_s25, %s1998_s24  }
  0x2a   : > { %210 = sbr.rel (%p1459_p8) target bundleno = 289 (0x121), region = 36  ;;  %s1518_s10 = sand.u32 (!%p1459_p8), 1, %s1373_s16  }
  0x2b   : > { %s1145_s11 = smul.u32 (!%p1459_p8), 96, %s1518_s10  ;;  %s213_s5 = scalar_lea.sflag (!%p1459_p8), [#allocation3], %s1518_s10 }
  0x2d   : > { %s1522_s6 = scalar_lea.vmem (!%p1459_p8), [#allocation2], %s1145_s11 }
  0x2f   : > { %1356 = dma.done.wait (%p1446_p4), %s213_s5, 1536  }
  0x30   : > { %1358 = vsyncadd (%p1446_p4), %s213_s5, 4294965760 }
  0x31   : > { %1360 = dma.done.wait (%p42_p1), [#allocation6], 3712  }
  0x32   : > { %1362 = vsyncadd (%p42_p1), [#allocation6], 4294963584  ;;  %vm330_vm0 = vcmask 1040384   ;;  %v290_v0 = vld [vmem:[#allocation5 + $0xc0] sm:$0x1]  ;;  %v287_v3 = vld [vmem:[#allocation5 + $0xa8] sm:$0xff] }
  0x33   : > { %v1532_v1 = vld [vmem:[#allocation5 + $0xc8] sm:$0x1]  ;;  %v1534_v2 = vld [vmem:[#allocation5 + $0xd0] sm:$0x1]  ;;  %1069 = vmatpush.msk.msra.mxu0 %vm330_vm0, %v290_v0  ;;  %1116 = vmatpush.msk.msra.mxu3 %vm330_vm0, %v290_v0  ;;  %v1540_v5 = vld [vmem:[#allocation5 + $0xb8] sm:$0xff]  ;;  %vm293_vm1 = vcmask 531456  }
  0x34   : > { %v1538_v4 = vld [vmem:[#allocation5 + $0xb0] sm:$0xff]  ;;  %1082 = vmatpush.msk.msra.mxu1 %vm330_vm0, %v1532_v1  ;;  %1095 = vmatpush.msk.msra.mxu2 %vm330_vm0, %v1534_v2  ;;  %v285_v7 = vld [vmem:[#allocation5 + $0x98] sm:$0xff]  ;;  %v1546_v8 = vld [vmem:[#allocation5 + $0xa0] sm:$0xff]  ;;  %vm577_vm2 = vcmask 1046528   ;;  %vm761_vm3 = vcmask 1045504   ;;  %s1068_s28 = sshll.u32 %s1518_s10, 6 }
  0x35   : > { %v284_v6 = vld [vmem:[#allocation5 + $0x90] sm:$0xff]  ;;  %348 = vmatpush.msra.mxu0 %v287_v3  ;;  %1117 = vmatpush.msra.mxu3 %v287_v3  ;;  %v281_v9 = vld [vmem:[#allocation5 + $0x78] sm:$0xff]  ;;  %v282_v10 = vld [vmem:[#allocation5 + $0x80] sm:$0xff]  ;;  %s1739_s7 = scalar_lea.vmem [#allocation8], %s1068_s28  ;;  %s1115_s8 = sshll.u32 %s1437_s19, 6 }
  0x36   : > { %401 = vmatpush.msra.mxu1 %v1538_v4  ;;  %454 = vmatpush.msra.mxu2 %v1540_v5  ;;  %v1550_v11 = vld [vmem:[#allocation5 + $0x88] sm:$0xff]  ;;  %v278_v12 = vld [vmem:[#allocation5 + $0x60] sm:$0xff]  ;;  %v1553_v14 = vld [vmem:[#allocation5 + $0x70] sm:$0xff]  ;;  %s961_s13 = scalar_lea.hbm %s1990_s4, %s1115_s8  ;;  %s962_s14 = sshll.u32 %s1739_s7, 4  ;;  %s963_s14 = int_to_ptr.vmem [resolvable:$true] %s962_s14 }
  0x37   : > { %349 = vmatpush.msra.mxu0 %v284_v6  ;;  %1118 = vmatpush.msra.mxu3 %v284_v6  ;;  %v279_v13 = vld [vmem:[#allocation5 + $0x68] sm:$0xff]  ;;  %v276_v16 = vld [vmem:[#allocation5 + $0x50] sm:$0xff]  ;;  %v1556_v17 = vld [vmem:[#allocation5 + $0x58] sm:$0xff]  ;;  %s964_s29 = sshll.u32 %s961_s13, 4  ;;  %s949_s30 = scalar_lea.sflag [#allocation4], %s1518_s10  ;;  %s965_s29 = int_to_ptr.hbm [resolvable:$true] %s964_s29 }
  0x38   : > { %402 = vmatpush.msra.mxu1 %v285_v7  ;;  %455 = vmatpush.msra.mxu2 %v1546_v8  ;;  %v275_v15 = vld [vmem:[#allocation5 + $0x48] sm:$0xff]  ;;  %v272_v18 = vld [vmem:[#allocation5 + $0x30] sm:$0xff]  ;;  %v273_v19 = vld [vmem:[#allocation5 + $0x38] sm:$0xff]  ;;  %s1325_s27 = sshra.s32 %s965_s29, 4  ;;  %s1331_s5 = scalar_lea.hbm %s1990_s4, 128  ;;  %s1326_s27 = int_to_ptr.hbm [resolvable:$true] %s1325_s27 }
  0x39   : > { %350 = vmatpush.msra.mxu0 %v281_v9  ;;  %1119 = vmatpush.msra.mxu3 %v281_v9  ;;  %v274_v20 = vld [vmem:[#allocation5 + $0x40] sm:$0xff]  ;;  %v269_v21 = vld [vmem:[#allocation5 + $0x18] sm:$0xff]  ;;  %v271_v23 = vld [vmem:[#allocation5 + $0x28] sm:$0xff]  ;;  %s1327_s24 = scalar_lea.hbm %s1326_s27, 64  ;;  %p1332_p11 = scmp.lt.s32.totalorder %s1326_s27, %s1990_s4 }
  0x3a   : > { %403 = vmatpush.msra.mxu1 %v282_v10  ;;  %456 = vmatpush.msra.mxu2 %v1550_v11  ;;  %v270_v22 = vld [vmem:[#allocation5 + $0x20] sm:$0xff]  ;;  %v267_v25 = vld [vmem:[#allocation5 + $0x8] sm:$0xff]  ;;  %v268_v26 = vld [vmem:[#allocation5 + $0x10] sm:$0xff]  ;;  %p1328_p1 = scmp.ne.s32.totalorder %s1326_s27, %s1327_s24  ;;  %p1333_p9 = scmp.lt.s32.totalorder %s1331_s5, %s1327_s24 }
  0x3b   : > { %351 = vmatpush.msra.mxu0 %v278_v12  ;;  %1120 = vmatpush.msra.mxu3 %v278_v12  ;;  %v266_v24 = vld [vmem:[#allocation5] sm:$0xff]  ;;  %v263_v28 = vld [vmem:[%s1522_s6 + $0x48] sm:$0xff]  ;;  %v264_v30 = vld [vmem:[%s1522_s6 + $0x50] sm:$0xff] }
  0x3c   : > { %404 = vmatpush.msra.mxu1 %v279_v13  ;;  %457 = vmatpush.msra.mxu2 %v1553_v14  ;;  %v254_v27 = vld [vmem:[%s1522_s6] sm:$0xff]  ;;  %v255_v29 = vld [vmem:[%s1522_s6 + $0x8] sm:$0xff]  ;;  %v256_v31 = vld [vmem:[%s1522_s6 + $0x10] sm:$0xff]  ;;  %p1329_p4 = pnand %p1328_p1, %p1488_p5  ;;  %p1334_p2 = por %p1333_p9, %p1332_p11 }
  0x3d   : > { %352 = vmatpush.msra.mxu0 %v275_v15  ;;  %1121 = vmatpush.msra.mxu3 %v275_v15  ;;  %v265_v32 = vld [vmem:[%s1522_s6 + $0x58] sm:$0xff]  ;;  %v258_v34 = vld [vmem:[%s1522_s6 + $0x20] sm:$0xff]  ;;  %v259_v35 = vld [vmem:[%s1522_s6 + $0x28] sm:$0xff] }
  0x3e   : > { %405 = vmatpush.msra.mxu1 %v276_v16  ;;  %458 = vmatpush.msra.mxu2 %v1556_v17  ;;  %v257_v33 = vld [vmem:[%s1522_s6 + $0x18] sm:$0xff]  ;;  %v260_v36 = vld [vmem:[%s1522_s6 + $0x30] sm:$0xff]  ;;  %v262_v38 = vld [vmem:[%s1522_s6 + $0x40] sm:$0xff]  ;;  %p1330_p8 = pneg %p1329_p4 }
  0x3f   : > { %353 = vmatpush.msra.mxu0 %v272_v18  ;;  %1122 = vmatpush.msra.mxu3 %v272_v18  ;;  %v261_v37 = vld [vmem:[%s1522_s6 + $0x38] sm:$0xff] }
  0x40   : > { %406 = vmatpush.msra.mxu1 %v273_v19  ;;  %459 = vmatpush.msra.mxu2 %v274_v20  ;;  %v499_v40 = vld [vmem:[#allocation7] sm:$0xff]  ;;  %p1335_p10 = pnand %p1334_p2, %p1330_p8 }
  0x41   : > { %354 = vmatpush.msra.mxu0 %v269_v21  ;;  %1123 = vmatpush.msra.mxu3 %v269_v21  ;;  %v1618_v42 = vperm.slane %v499_v40, 0  ;;  %v1620_v43 = vperm.slane %v499_v40, 3  ;;  %v1622_v44 = vperm.slane %v499_v40, 1  ;;  %v1626_v46 = vperm.slane %v499_v40, 2 }
  0x42   : > { %407 = vmatpush.msra.mxu1 %v270_v22  ;;  %460 = vmatpush.msra.mxu2 %v271_v23  ;;  %v1628_v47 = vperm.slane %v499_v40, 6  ;;  %v1630_v48 = vperm.slane %v499_v40, 4  ;;  %v1635_v52 = vperm.slane %v499_v40, 7  ;;  %v1638_v57 = vperm.slane %v499_v40, 5 }
  0x43   : > { %355 = vmatpush.msra.mxu0 %v266_v24  ;;  %1124 = vmatpush.msra.mxu3 %v266_v24 }
  0x44   : > { %408 = vmatpush.msra.mxu1 %v267_v25  ;;  %461 = vmatpush.msra.mxu2 %v268_v26 }
  0x45   : > { %1070 = vmatmul.msk.f32.vlgmr.msra.gmra.mxu0 %vm293_vm1, %v254_v27  ;;  %1079 = vmatmul.msk.f32.vlgmr.msra.gmra.mxu3 %vm293_vm1, %v263_v28 }
  0x46   : > { %1125 = vmatpush.msk.msrb.mxu3 %vm330_vm0, %v1532_v1  ;;  %1083 = vmatmul.msk.f32.vlgmr.msra.gmra.mxu1 %vm293_vm1, %v254_v27 }
  0x47   : > { %1096 = vmatmul.msk.f32.vlgmr.msra.gmra.mxu2 %vm293_vm1, %v254_v27 }
  0x48   : > { %1126 = vmatpush.msrb.mxu3 %v1538_v4 }
  0x4a   : > { %1127 = vmatpush.msrb.mxu3 %v285_v7 }
  0x4c   : > { %1128 = vmatpush.msrb.mxu3 %v282_v10 }
  0x4d   : > { %1071 = vmatmul.msk.f32.gmra.mxu0 %vm293_vm1, %v255_v29  ;;  %1080 = vmatmul.msk.f32.gmra.mxu3 %vm293_vm1, %v264_v30 }
  0x4e   : > { %1084 = vmatmul.msk.f32.gmra.mxu1 %vm293_vm1, %v255_v29  ;;  %1129 = vmatpush.msrb.mxu3 %v279_v13 }
  0x4f   : > { %1097 = vmatmul.msk.f32.gmra.mxu2 %vm293_vm1, %v255_v29 }
  0x50   : > { %1130 = vmatpush.msrb.mxu3 %v276_v16 }
  0x52   : > { %1131 = vmatpush.msrb.mxu3 %v273_v19 }
  0x54   : > { %1132 = vmatpush.msrb.mxu3 %v270_v22 }
  0x55   : > { %1072 = vmatmul.msk.f32.gmra.mxu0 %vm293_vm1, %v256_v31  ;;  %1081 = vmatmul.msk.f32.gmra.mxu3 %vm293_vm1, %v265_v32 }
  0x56   : > { %1085 = vmatmul.msk.f32.gmra.mxu1 %vm293_vm1, %v256_v31  ;;  %1133 = vmatpush.msrb.mxu3 %v267_v25 }
  0x57   : > { %1098 = vmatmul.msk.f32.gmra.mxu2 %vm293_vm1, %v256_v31 }
  0x58   : > { %1134 = vmatpush.msk.msra.mxu3 %vm330_vm0, %v1534_v2 }
  0x5a   : > { %1135 = vmatpush.msra.mxu3 %v1540_v5 }
  0x5c   : > { %1136 = vmatpush.msra.mxu3 %v1546_v8 }
  0x5d   : > { %1073 = vmatmul.msk.f32.gmra.mxu0 %vm293_vm1, %v257_v33  ;;  %1092 = vmatmul.msk.f32.vlgmr.msrb.gmra.mxu3 %vm293_vm1, %v263_v28 }
  0x5e   : > { %1086 = vmatmul.msk.f32.gmra.mxu1 %vm293_vm1, %v257_v33  ;;  %1137 = vmatpush.msra.mxu3 %v1550_v11  ;;  %v1655_v11 = vld [vmem:[#allocation7 + $0x8] ss:$0 sm:$0xff] }
  0x5f   : > { %1099 = vmatmul.msk.f32.gmra.mxu2 %vm293_vm1, %v257_v33 }
  0x60   : > { %1138 = vmatpush.msra.mxu3 %v1553_v14 }
  0x62   : > { %1139 = vmatpush.msra.mxu3 %v1556_v17 }
  0x64   : > { %1140 = vmatpush.msra.mxu3 %v274_v20 }
  0x65   : > { %1074 = vmatmul.msk.f32.gmra.mxu0 %vm293_vm1, %v258_v34  ;;  %1093 = vmatmul.msk.f32.gmra.mxu3 %vm293_vm1, %v264_v30 }
  0x66   : > { %1087 = vmatmul.msk.f32.gmra.mxu1 %vm293_vm1, %v258_v34  ;;  %1141 = vmatpush.msra.mxu3 %v271_v23 }
  0x67   : > { %1100 = vmatmul.msk.f32.gmra.mxu2 %vm293_vm1, %v258_v34 }
  0x68   : > { %1142 = vmatpush.msra.mxu3 %v268_v26 }
  0x6d   : > { %1075 = vmatmul.msk.f32.gmra.mxu0 %vm293_vm1, %v259_v35  ;;  %1094 = vmatmul.msk.f32.gmra.mxu3 %vm293_vm1, %v265_v32 }
  0x6e   : > { %1088 = vmatmul.msk.f32.gmra.mxu1 %vm293_vm1, %v259_v35 }
  0x6f   : > { %1101 = vmatmul.msk.f32.gmra.mxu2 %vm293_vm1, %v259_v35 }
  0x75   : > { %1076 = vmatmul.msk.f32.gmra.mxu0 %vm293_vm1, %v260_v36  ;;  %1105 = vmatmul.msk.f32.vlgmr.msra.gmra.mxu3 %vm293_vm1, %v263_v28 }
  0x76   : > { %1089 = vmatmul.msk.f32.gmra.mxu1 %vm293_vm1, %v260_v36 }
  0x77   : > { %1102 = vmatmul.msk.f32.gmra.mxu2 %vm293_vm1, %v260_v36 }
  0x7d   : > { %1077 = vmatmul.msk.f32.gmra.mxu0 %vm293_vm1, %v261_v37  ;;  %1106 = vmatmul.msk.f32.gmra.mxu3 %vm293_vm1, %v264_v30 }
  0x7e   : > { %1090 = vmatmul.msk.f32.gmra.mxu1 %vm293_vm1, %v261_v37 }
  0x7f   : > { %1103 = vmatmul.msk.f32.gmra.mxu2 %vm293_vm1, %v261_v37 }
  0x85   : > { %1078 = vmatmul.msk.f32.gmra.mxu0 %vm293_vm1, %v262_v38  ;;  %1107 = vmatmul.msk.f32.gmra.mxu3 %vm293_vm1, %v265_v32 }
  0x86   : > { %1091 = vmatmul.msk.f32.gmra.mxu1 %vm293_vm1, %v262_v38 }
  0x87   : > { %1104 = vmatmul.msk.f32.gmra.mxu2 %vm293_vm1, %v262_v38 }
  0xc2   : > { %v357_v39 = vpop.f32.mrf.mxu0 }
  0xc3   : > { %v410_v41 = vpop.f32.mrf.mxu1  ;;  %v502_v49 = vmul.f32 %v1618_v42, %v357_v39  ;;  %v553_v50 = vmul.f32 %v1620_v43, %v357_v39  ;;  %v737_v59 = vmul.f32 %v1628_v47, %v357_v39 }
  0xc4   : > { %v519_v51 = vmul.f32 %v1622_v44, %v410_v41  ;;  %v615_v60 = vmul.f32 %v1630_v48, %v410_v41  ;;  %v799_v0 = vmul.f32 %v1635_v52, %v410_v41 }
  0xc5   : > { %v578_v62 = vrot.slane %v553_v50, 1  ;;  %v762_v7 = vrot.slane %v737_v59, 2 }
  0xc6   : > { %v527_v63 = vadd.f32 %v519_v51, %v502_v49  ;;  %v639_v8 = vrot.slane %v615_v60, 1  ;;  %v823_v10 = vrot.slane %v799_v0, 2 }
  0xc8   : > { %v1624_v45 = vpop.f32.mrf.mxu3 }
  0xc9   : > { %v1661_v17 = vmul.f32 %v1618_v42, %v1624_v45  ;;  %v746_v18 = vmul.f32 %v1628_v47, %v1624_v45  ;;  %v562_v50 = vmul.f32 %v1620_v43, %v1624_v45 }
  0xca   : > { %v463_v53 = vpop.f32.mrf.mxu2  ;;  %v360_v54 = vpop.f32.mrf.mxu0 }
  0xcb   : > { %v413_v55 = vpop.f32.mrf.mxu1  ;;  %v536_v56 = vmul.f32 %v1626_v46, %v463_v53  ;;  %v554_v58 = vmul.f32 %v1620_v43, %v360_v54  ;;  %v676_v3 = vmul.f32 %v1638_v57, %v463_v53  ;;  %v1650_v5 = vmul.f32 %v1628_v47, %v360_v54 }
  0xcc   : > { %v1644_v61 = vmul.f32 %v1630_v48, %v413_v55  ;;  %v503_v12 = vmul.f32 %v1618_v42, %v360_v54  ;;  %v520_v14 = vmul.f32 %v1622_v44, %v413_v55  ;;  %v1666_v19 = vmul.f32 %v1635_v52, %v413_v55 }
  0xcd   : > { %v579_v1 = vrot.slane %v554_v58, 1  ;;  %v544_v2 = vadd.f32 %v536_v56, %v527_v63  ;;  %v700_v22 = vrot.slane %v676_v3, 1  ;;  %v763_v23 = vrot.slane %v1650_v5, 2 }
  0xce   : > { %v640_v9 = vrot.slane %v1644_v61, 1  ;;  %v860_v30 = vmul.f32 %v1655_v11, %v463_v53  ;;  %v528_v31 = vadd.f32 %v520_v14, %v503_v12  ;;  %v824_v34 = vrot.slane %v1666_v19, 2 }
  0xcf   : > { %v580_v4 = vsel %vm577_vm2, %v578_v62, %v579_v1  ;;  %v764_v51 = vsel %vm761_vm3, %v762_v7, %v763_v23  ;;  %v777_v55 = vrot.slane %v746_v18, 2  ;;  %v593_v14 = vrot.slane %v562_v50, 1 }
  0xd0   : > { %v1652_v6 = vpop.f32.mrf.mxu3  ;;  %v606_v13 = vadd.f32 %v580_v4, %v544_v2  ;;  %v641_v26 = vsel %vm577_vm2, %v639_v8, %v640_v9  ;;  %v884_v56 = vrot.slane %v860_v30, 2  ;;  %v825_v62 = vsel %vm761_vm3, %v823_v10, %v824_v34  ;;  %v1702_v4 = vld [vmem:[%s1989_s3] ss:$0 sm:$0xff] }
  0xd1   : > { %v1681_v35 = vmul.f32 %v1620_v43, %v1652_v6  ;;  %v1685_v36 = vmul.f32 %v1628_v47, %v1652_v6 }
  0xd2   : > { %v466_v15 = vpop.f32.mrf.mxu2  ;;  %v363_v16 = vpop.f32.mrf.mxu0  ;;  %v667_v32 = vadd.f32 %v641_v26, %v606_v13 }
  0xd3   : > { %v677_v20 = vmul.f32 %v1638_v57, %v466_v15  ;;  %v416_v21 = vpop.f32.mrf.mxu1  ;;  %v537_v24 = vmul.f32 %v1626_v46, %v466_v15  ;;  %v555_v25 = vmul.f32 %v1620_v43, %v363_v16  ;;  %v1674_v28 = vmul.f32 %v1655_v11, %v466_v15 }
  0xd4   : > { %v617_v29 = vmul.f32 %v1630_v48, %v416_v21  ;;  %v739_v41 = vmul.f32 %v1628_v47, %v363_v16  ;;  %v778_v63 = vrot.slane %v1685_v36, 2  ;;  %v801_v0 = vmul.f32 %v1635_v52, %v416_v21 }
  0xd5   : > { %v701_v27 = vrot.slane %v677_v20, 1  ;;  %v581_v33 = vrot.slane %v555_v25, 1  ;;  %v545_v38 = vadd.f32 %v537_v24, %v528_v31  ;;  %v885_v53 = vrot.slane %v1674_v28, 2 }
  0xd6   : > { %v642_v54 = vrot.slane %v617_v29, 1  ;;  %v594_v2 = vrot.slane %v1681_v35, 1  ;;  %v765_v5 = vrot.slane %v739_v41, 2  ;;  %v1710_v15 = vmul.f32 %v1618_v42, %v1652_v6 }
  0xd7   : > { %v702_v37 = vsel %vm577_vm2, %v700_v22, %v701_v27  ;;  %v582_v40 = vsel %vm577_vm2, %v579_v1, %v581_v33  ;;  %v886_v8 = vsel %vm761_vm3, %v884_v56, %v885_v53  ;;  %v1716_v19 = vsel %vm761_vm3, %v777_v55, %v778_v63 }
  0xd8   : > { %v728_v39 = vadd.f32 %v702_v37, %v667_v32  ;;  %v390_v49 = vpop.f32.mrf.mxu3  ;;  %v607_v59 = vadd.f32 %v582_v40, %v545_v38  ;;  %v643_v10 = vsel %vm577_vm2, %v640_v9, %v642_v54  ;;  %v826_v20 = vrot.slane %v801_v0, 2 }
  0xd9   : > { %v564_v7 = vmul.f32 %v1620_v43, %v390_v49  ;;  %v1719_v21 = vmul.f32 %v1628_v47, %v390_v49  ;;  %v766_v28 = vsel %vm761_vm3, %v763_v23, %v765_v5  ;;  %v1729_v31 = vsel %vm577_vm2, %v593_v14, %v594_v2 }
  0xda   : > { %v790_v58 = vadd.f32 %v764_v51, %v728_v39  ;;  %v469_v60 = vpop.f32.mrf.mxu2  ;;  %v366_v61 = vpop.f32.mrf.mxu0  ;;  %v668_v18 = vadd.f32 %v643_v10, %v607_v59  ;;  %v827_v39 = vsel %vm761_vm3, %v824_v34, %v826_v20 }
  0xdb   : > { %v678_v45 = vmul.f32 %v1638_v57, %v469_v60  ;;  %v419_v1 = vpop.f32.mrf.mxu1  ;;  %v862_v13 = vmul.f32 %v1655_v11, %v469_v60  ;;  %v596_v24 = vrot.slane %v564_v7, 1  ;;  %v556_v6 = vmul.f32 %v1620_v43, %v366_v61 }
  0xdc   : > { %v851_v3 = vadd.f32 %v825_v62, %v790_v58  ;;  %v1726_v30 = vmul.f32 %v1628_v47, %v366_v61  ;;  %v521_v35 = vmul.f32 %v1622_v44, %v419_v1  ;;  %v780_v40 = vrot.slane %v1719_v21, 2 }
  0xdd   : > { %v703_v12 = vrot.slane %v678_v45, 1  ;;  %v887_v29 = vrot.slane %v862_v13, 2  ;;  %v618_v23 = vmul.f32 %v1630_v48, %v419_v1  ;;  %v1737_v41 = vmul.f32 %v1635_v52, %v419_v1 }
  0xde   : > { %v912_v16 = vadd.f32 %v886_v8, %v851_v3  ;;  %v1743_v50 = vsel %vm577_vm2, %v594_v2, %v596_v24  ;;  %v583_v54 = vrot.slane %v556_v6, 1  ;;  %v767_v56 = vrot.slane %v1726_v30, 2 }
  0xdf   : > { %v704_v9 = vsel %vm577_vm2, %v701_v27, %v703_v12  ;;  %v504_v27 = vmul.f32 %v1618_v42, %v366_v61  ;;  %v888_v34 = vsel %vm761_vm3, %v885_v53, %v887_v29  ;;  %v644_v45 = vrot.slane %v618_v23, 1 }
  0xe0   : > { %v924_v22 = vadd.f32 %v1702_v4, %v912_v16  ;;  %v729_v25 = vadd.f32 %v704_v9, %v668_v18  ;;  %v437_v26 = vpop.f32.mrf.mxu3  ;;  %v828_v1 = vrot.slane %v1737_v41, 2 }
  0xe1   : > { %v525_v55 = vmul.f32 %v1622_v44, %v437_v26  ;;  %v529_v61 = vadd.f32 %v521_v35, %v504_v27  ;;  %v1751_v62 = vmul.f32 %v1630_v48, %v437_v26  ;;  %v1758_v2 = vmul.f32 %v1635_v52, %v437_v26 }
  0xe2   : > { %v932_v32 = vmax.f32 %v924_v22, 0.0  ;;  %v791_v33 = vadd.f32 %v766_v28, %v729_v25  ;;  %v472_v37 = vpop.f32.mrf.mxu2  ;;  %v369_v38 = vpop.f32.mrf.mxu0 }
  0xe3   : > { %v422_v49 = vpop.f32.mrf.mxu1  ;;  %v538_v58 = vmul.f32 %v1626_v46, %v472_v37  ;;  %v557_v59 = vmul.f32 %v1620_v43, %v369_v38  ;;  %v1762_v5 = vadd.f32 %v525_v55, %v1661_v17  ;;  %v679_v7 = vmul.f32 %v1638_v57, %v472_v37 }
  0xe4   : > { %940 = vst [vmem:[%s1739_s7] sm:$0xff] %v932_v32  ;;  %v852_v51 = vadd.f32 %v827_v39, %v791_v33  ;;  %v1754_v0 = vmul.f32 %v1630_v48, %v422_v49  ;;  %v505_v8 = vmul.f32 %v1618_v42, %v369_v38  ;;  %v1768_v14 = vmul.f32 %v1628_v47, %v369_v38 }
  0xe5   : > { %v584_v53 = vrot.slane %v557_v59, 1  ;;  %v546_v12 = vadd.f32 %v538_v58, %v529_v61  ;;  %v522_v16 = vmul.f32 %v1622_v44, %v422_v49  ;;  %v654_v20 = vrot.slane %v1751_v62, 1 }
  0xe6   : > { %v913_v60 = vadd.f32 %v888_v34, %v852_v51  ;;  %v645_v17 = vrot.slane %v1754_v0, 1  ;;  %v1774_v9 = vmul.f32 %v1635_v52, %v422_v49  ;;  %v838_v25 = vrot.slane %v1758_v2, 2 }
  0xe7   : > { %v585_v13 = vsel %vm577_vm2, %v583_v54, %v584_v53  ;;  %v863_v6 = vmul.f32 %v1655_v11, %v472_v37  ;;  %v705_v30 = vrot.slane %v679_v7, 1  ;;  %v768_v35 = vrot.slane %v1768_v14, 2 }
  0xe8   : > { %v925_v3 = vadd.f32 %v1702_v4, %v913_v60  ;;  %v440_v10 = vpop.f32.mrf.mxu3  ;;  %v608_v26 = vadd.f32 %v585_v13, %v546_v12  ;;  %v530_v38 = vadd.f32 %v522_v16, %v505_v8  ;;  %v646_v23 = vsel %vm577_vm2, %v644_v45, %v645_v17 }
  0xe9   : > { %v1779_v28 = vmul.f32 %v1630_v48, %v440_v10  ;;  %v1783_v32 = vmul.f32 %v1635_v52, %v440_v10  ;;  %v829_v41 = vrot.slane %v1774_v9, 2  ;;  %v526_v55 = vmul.f32 %v1622_v44, %v440_v10 }
  0xea   : > { %v933_v18 = vmax.f32 %v925_v3, 0.0  ;;  %v475_v22 = vpop.f32.mrf.mxu2  ;;  %v372_v24 = vpop.f32.mrf.mxu0  ;;  %v669_v54 = vadd.f32 %v646_v23, %v608_v26  ;;  %v889_v8 = vrot.slane %v863_v6, 2  ;;  %v769_v10 = vsel %vm761_vm3, %v767_v56, %v768_v35 }
  0xeb   : > { %v425_v29 = vpop.f32.mrf.mxu1  ;;  %v539_v33 = vmul.f32 %v1626_v46, %v475_v22  ;;  %v680_v27 = vmul.f32 %v1638_v57, %v475_v22  ;;  %v1789_v39 = vmul.f32 %v1655_v11, %v475_v22  ;;  %v558_v37 = vmul.f32 %v1620_v43, %v372_v24 }
  0xec   : > { %941 = vst [vmem:[%s1739_s7 + $0x8] sm:$0xff] %v933_v18  ;;  %v620_v51 = vmul.f32 %v1630_v48, %v425_v29  ;;  %v655_v34 = vrot.slane %v1779_v28, 1  ;;  %v839_v59 = vrot.slane %v1783_v32, 2  ;;  %v742_v62 = vmul.f32 %v1628_v47, %v372_v24 }
  0xed   : > { %v706_v49 = vrot.slane %v680_v27, 1  ;;  %v586_v58 = vrot.slane %v558_v37, 1  ;;  %v547_v60 = vadd.f32 %v539_v33, %v530_v38  ;;  %v890_v2 = vrot.slane %v1789_v39, 2 }
  0xee   : > { %v647_v7 = vrot.slane %v620_v51, 1  ;;  %v804_v13 = vmul.f32 %v1635_v52, %v425_v29  ;;  %v830_v18 = vsel %vm761_vm3, %v828_v1, %v829_v41  ;;  %v1813_v56 = vsel %vm577_vm2, %v654_v20, %v655_v34 }
  0xef   : > { %v707_v61 = vsel %vm577_vm2, %v705_v30, %v706_v49  ;;  %v587_v3 = vsel %vm577_vm2, %v584_v53, %v586_v58  ;;  %v1808_v30 = vadd.f32 %v526_v55, %v1710_v15  ;;  %v1818_v53 = vsel %vm761_vm3, %v838_v25, %v839_v59 }
  0xf0   : > { %v443_v0 = vpop.f32.mrf.mxu3  ;;  %v730_v45 = vadd.f32 %v707_v61, %v669_v54  ;;  %v609_v12 = vadd.f32 %v587_v3, %v547_v60  ;;  %v770_v1 = vrot.slane %v742_v62, 2  ;;  %v891_v29 = vsel %vm761_vm3, %v889_v8, %v890_v2 }
  0xf1   : > { %v648_v33 = vsel %vm577_vm2, %v645_v17, %v647_v7  ;;  %v831_v15 = vrot.slane %v804_v13, 2  ;;  %v1823_v39 = vmul.f32 %v1630_v48, %v443_v0  ;;  %v1835_v62 = vmul.f32 %v1635_v52, %v443_v0 }
  0xf2   : > { %v478_v14 = vpop.f32.mrf.mxu2  ;;  %v375_v16 = vpop.f32.mrf.mxu0  ;;  %v792_v9 = vadd.f32 %v769_v10, %v730_v45  ;;  %v670_v38 = vadd.f32 %v648_v33, %v609_v12  ;;  %v771_v54 = vsel %vm761_vm3, %v768_v35, %v770_v1 }
  0xf3   : > { %v681_v22 = vmul.f32 %v1638_v57, %v478_v14  ;;  %v865_v24 = vmul.f32 %v1655_v11, %v478_v14  ;;  %v428_v26 = vpop.f32.mrf.mxu1  ;;  %v559_v51 = vmul.f32 %v1620_v43, %v375_v16  ;;  %v1828_v25 = vmul.f32 %v1628_v47, %v375_v16 }
  0xf4   : > { %v853_v6 = vadd.f32 %v830_v18, %v792_v9  ;;  %v506_v17 = vmul.f32 %v1618_v42, %v375_v16  ;;  %v523_v58 = vmul.f32 %v1622_v44, %v428_v26  ;;  %v832_v3 = vsel %vm761_vm3, %v829_v41, %v831_v15 }
  0xf5   : > { %v708_v27 = vrot.slane %v681_v22, 1  ;;  %v892_v37 = vrot.slane %v865_v24, 2  ;;  %v657_v35 = vrot.slane %v1823_v39, 1  ;;  %v1842_v8 = vmul.f32 %v1635_v52, %v428_v26 }
  0xf6   : > { %v914_v20 = vadd.f32 %v891_v29, %v853_v6  ;;  %v588_v0 = vrot.slane %v559_v51, 1  ;;  %v772_v16 = vrot.slane %v1828_v25, 2  ;;  %v531_v22 = vadd.f32 %v523_v58, %v506_v17 }
  0xf7   : > { %v709_v23 = vsel %vm577_vm2, %v706_v49, %v708_v27  ;;  %v621_v49 = vmul.f32 %v1630_v48, %v428_v26  ;;  %v893_v14 = vsel %vm761_vm3, %v890_v2, %v892_v37  ;;  %v833_v33 = vrot.slane %v1842_v8, 2 }
  0xf8   : > { %v731_v55 = vadd.f32 %v709_v23, %v670_v38  ;;  %v490_v60 = vpop.f32.mrf.mxu3  ;;  %v926_v61 = vadd.f32 %v1702_v4, %v914_v20 }
  0xf9   : > { %v542_v45 = vmul.f32 %v1626_v46, %v490_v60  ;;  %v685_v41 = vmul.f32 %v1638_v57, %v490_v60  ;;  %v649_v1 = vrot.slane %v621_v49, 1  ;;  %v1852_v29 = vmul.f32 %v1655_v11, %v490_v60 }
  0xfa   : > { %v793_v7 = vadd.f32 %v771_v54, %v731_v55  ;;  %v481_v10 = vpop.f32.mrf.mxu2  ;;  %v378_v12 = vpop.f32.mrf.mxu0  ;;  %v934_v13 = vmax.f32 %v926_v61, 0.0 }
  0xfb   : > { %v431_v18 = vpop.f32.mrf.mxu1  ;;  %v550_v24 = vadd.f32 %v542_v45, %v1762_v5  ;;  %v540_v26 = vmul.f32 %v1626_v46, %v481_v10  ;;  %v682_v6 = vmul.f32 %v1638_v57, %v481_v10  ;;  %v1856_v27 = vmul.f32 %v1655_v11, %v481_v10 }
  0xfc   : > { %v854_v9 = vadd.f32 %v832_v3, %v793_v7  ;;  %942 = vst [vmem:[%s1739_s7 + $0x10] sm:$0xff] %v934_v13  ;;  %v560_v38 = vmul.f32 %v1620_v43, %v378_v12  ;;  %v507_v15 = vmul.f32 %v1618_v42, %v378_v12  ;;  %v1862_v37 = vmul.f32 %v1628_v47, %v378_v12 }
  0xfd   : > { %v612_v5 = vadd.f32 %v1729_v31, %v550_v24  ;;  %v1865_v20 = vmul.f32 %v1630_v48, %v431_v18  ;;  %v524_v25 = vmul.f32 %v1622_v44, %v431_v18  ;;  %v1870_v54 = vmul.f32 %v1635_v52, %v431_v18 }
  0xfe   : > { %v915_v2 = vadd.f32 %v893_v14, %v854_v9  ;;  %v589_v51 = vrot.slane %v560_v38, 1  ;;  %v548_v17 = vadd.f32 %v540_v26, %v531_v22  ;;  %v710_v31 = vrot.slane %v682_v6, 1 }
  0xff   : > { %v715_v58 = vrot.slane %v685_v41, 1  ;;  %v650_v42 = vrot.slane %v1865_v20, 1  ;;  %v673_v7 = vadd.f32 %v1813_v56, %v612_v5  ;;  %v899_v8 = vrot.slane %v1852_v29, 2 }
 0x100   : > { %v927_v23 = vadd.f32 %v1702_v4, %v915_v2  ;;  %v493_v55 = vpop.f32.mrf.mxu3  ;;  %v590_v61 = vsel %vm577_vm2, %v588_v0, %v589_v51  ;;  %v773_v12 = vrot.slane %v1862_v37, 2  ;;  %v532_v13 = vadd.f32 %v524_v25, %v507_v15 }
 0x101   : > { %v543_v45 = vmul.f32 %v1626_v46, %v493_v55  ;;  %v1876_v3 = vmul.f32 %v1638_v57, %v493_v55  ;;  %v610_v10 = vadd.f32 %v590_v61, %v548_v17  ;;  %v834_v14 = vrot.slane %v1870_v54, 2 }
 0x102   : > { %v935_v60 = vmax.f32 %v927_v23, 0.0  ;;  %v484_v49 = vpop.f32.mrf.mxu2  ;;  %v381_v44 = vpop.f32.mrf.mxu0  ;;  %v651_v9 = vsel %vm577_vm2, %v649_v1, %v650_v42  ;;  %v1888_v24 = vmul.f32 %v1655_v11, %v493_v55  ;;  %v894_v23 = vrot.slane %v1856_v27, 2 }
 0x103   : > { %v541_v0 = vmul.f32 %v1626_v46, %v484_v49  ;;  %v683_v18 = vmul.f32 %v1638_v57, %v484_v49  ;;  %v716_v22 = vrot.slane %v1876_v3, 1  ;;  %v561_v56 = vmul.f32 %v1620_v43, %v381_v44  ;;  %v434_v41 = vpop.f32.mrf.mxu1 }
 0x104   : > { %943 = vst [vmem:[%s1739_s7 + $0x18] sm:$0xff] %v935_v60  ;;  %v671_v26 = vadd.f32 %v651_v9, %v610_v10  ;;  %v1892_v29 = vmul.f32 %v1655_v11, %v484_v49  ;;  %v551_v2 = vadd.f32 %v543_v45, %v1808_v30  ;;  %v900_v1 = vrot.slane %v1888_v24, 2 }
 0x105   : > { %v711_v6 = vrot.slane %v683_v18, 1  ;;  %v549_v46 = vadd.f32 %v541_v0, %v532_v13  ;;  %v717_v38 = vsel %vm577_vm2, %v715_v58, %v716_v22  ;;  %v591_v5 = vrot.slane %v561_v56, 1 }
 0x106   : > { %v734_v37 = vadd.f32 %v717_v38, %v673_v7  ;;  %v745_v20 = vmul.f32 %v1628_v47, %v381_v44  ;;  %v623_v43 = vmul.f32 %v1630_v48, %v434_v41  ;;  %v774_v25 = vsel %vm761_vm3, %v772_v16, %v773_v12 }
 0x107   : > { %v712_v15 = vsel %vm577_vm2, %v710_v31, %v711_v6  ;;  %v592_v30 = vsel %vm577_vm2, %v589_v51, %v591_v5  ;;  %v895_v17 = vrot.slane %v1892_v29, 2  ;;  %v835_v47 = vsel %vm761_vm3, %v833_v33, %v834_v14 }
 0x108   : > { %v732_v55 = vadd.f32 %v712_v15, %v671_v26  ;;  %v796_v58 = vadd.f32 %v1716_v19, %v734_v37  ;;  %v611_v60 = vadd.f32 %v592_v30, %v549_v46  ;;  %v652_v61 = vrot.slane %v623_v43, 1  ;;  %v496_v16 = vpop.f32.mrf.mxu3 }
 0x109   : > { %v807_v48 = vmul.f32 %v1635_v52, %v434_v41  ;;  %v613_v45 = vadd.f32 %v1743_v50, %v551_v2  ;;  %v901_v19 = vsel %vm761_vm3, %v899_v8, %v900_v1  ;;  %v775_v3 = vrot.slane %v745_v20, 2 }
 0x10a   : > { %v487_v49 = vpop.f32.mrf.mxu2  ;;  %v794_v31 = vadd.f32 %v774_v25, %v732_v55  ;;  %v857_v51 = vadd.f32 %v1818_v53, %v796_v58  ;;  %v653_v7 = vsel %vm577_vm2, %v650_v42, %v652_v61  ;;  %v896_v52 = vsel %vm761_vm3, %v894_v23, %v895_v17 }
 0x10b   : > { %v684_v27 = vmul.f32 %v1638_v57, %v487_v49  ;;  %v868_v33 = vmul.f32 %v1655_v11, %v487_v49  ;;  %v672_v0 = vadd.f32 %v653_v7, %v611_v60  ;;  %v687_v18 = vmul.f32 %v1638_v57, %v496_v16 }
 0x10c   : > { %v855_v44 = vadd.f32 %v835_v47, %v794_v31  ;;  %v918_v13 = vadd.f32 %v901_v19, %v857_v51  ;;  %v658_v50 = vsel %vm577_vm2, %v655_v34, %v657_v35  ;;  %v836_v8 = vrot.slane %v807_v48, 2 }
 0x10d   : > { %v713_v10 = vrot.slane %v684_v27, 1  ;;  %v718_v41 = vrot.slane %v687_v18, 1  ;;  %v871_v26 = vmul.f32 %v1655_v11, %v496_v16  ;;  %v776_v39 = vsel %vm761_vm3, %v773_v12, %v775_v3 }
 0x10e   : > { %v916_v53 = vadd.f32 %v896_v52, %v855_v44  ;;  %v930_v42 = vadd.f32 %v1702_v4, %v918_v13  ;;  %v897_v28 = vrot.slane %v868_v33, 2  ;;  %v674_v29 = vadd.f32 %v658_v50, %v613_v45 }
 0x10f   : > { %v714_v9 = vsel %vm577_vm2, %v711_v6, %v713_v10  ;;  %v841_v34 = vrot.slane %v1835_v62, 2  ;;  %v719_v6 = vsel %vm577_vm2, %v716_v22, %v718_v41  ;;  %v837_v38 = vsel %vm761_vm3, %v834_v14, %v836_v8 }
 0x110   : > { %v733_v56 = vadd.f32 %v714_v9, %v672_v0  ;;  %v928_v57 = vadd.f32 %v1702_v4, %v916_v53  ;;  %v938_v35 = vmax.f32 %v930_v42, 0.0  ;;  %v735_v5 = vadd.f32 %v719_v6, %v674_v29 }
 0x111   : > { %v781_v11 = vsel %vm761_vm3, %v778_v63, %v780_v40  ;;  %v902_v12 = vrot.slane %v871_v26, 2  ;;  %v898_v22 = vsel %vm761_vm3, %v895_v17, %v897_v28  ;;  %v842_v54 = vsel %vm761_vm3, %v839_v59, %v841_v34 }
 0x112   : > { %v795_v2 = vadd.f32 %v776_v39, %v733_v56  ;;  %v936_v46 = vmax.f32 %v928_v57, 0.0  ;;  %946 = vst [vmem:[%s1739_s7 + $0x30] sm:$0xff] %v938_v35  ;;  %v797_v15 = vadd.f32 %v781_v11, %v735_v5 }
 0x113   : > { %v903_v21 = vsel %vm761_vm3, %v900_v1, %v902_v12 }
 0x114   : > { %v856_v62 = vadd.f32 %v837_v38, %v795_v2  ;;  %944 = vst [vmem:[%s1739_s7 + $0x20] sm:$0xff] %v936_v46  ;;  %v858_v36 = vadd.f32 %v842_v54, %v797_v15 }
 0x116   : > { %v917_v14 = vadd.f32 %v898_v22, %v856_v62  ;;  %v919_v40 = vadd.f32 %v903_v21, %v858_v36 }
 0x118   : > { %v929_v63 = vadd.f32 %v1702_v4, %v917_v14  ;;  %v931_v59 = vadd.f32 %v1702_v4, %v919_v40 }
 0x11a   : > { %v937_v32 = vmax.f32 %v929_v63, 0.0  ;;  %v939_v37 = vmax.f32 %v931_v59, 0.0 }
 0x11c   : > { %945 = vst [vmem:[%s1739_s7 + $0x28] sm:$0xff] %v937_v32 }
 0x11d   : > { %947 = vst [vmem:[%s1739_s7 + $0x38] sm:$0xff] %v939_v37 }
 0x11e   : > { %1338 = shalt.err (!%p1335_p10)
}
 0x11f   : > { %s1389_s10 = smov 128   ;;  %s1390_s26 = smov 8  }
 0x120   : > { %1156 = dma.vmem_to_hbm [thread:$0]  (%p1488_p5), %s963_s14, 1024, %s965_s29, %s949_s30, %s1389_s10, %s1389_s10, %s1390_s26  }
 0x121 PF: > { %s979_s28 = sand.u32 1, %s1369_s15   ;;  %p2000_p12 = scmp.ge.s32.totalorder %s1381_s18, 2 }
 0x122   : > { %s980_s7 = scalar_lea.sflag [#allocation4], %s979_s28 }
 0x123   : > { %p1170_p13 = pnand %p2000_p12, %p1451_p6 }
 0x125   : > { %p1171_p0 = pneg %p1170_p13 }
 0x127   : > { %1364 = dma.done.wait (%p1171_p0), %s980_s7, 1024  }
 0x128   : > { %1366 = vsyncadd (%p1171_p0), %s980_s7, 4294966272  ;;  %p18_p3 = scmp.ge.s32.totalorder %s1475_s12, 4   ;;  %s2001_s15 = smov %s1373_s16 }
 0x129   : > { %s2002_s16 = smov %s1377_s17  ;;  %s2003_s17 = smov %s1484_s20 }
 0x12a   : > { %s2004_s18 = smov %s1475_s12  ;;  %20 = sbr.rel (!%p18_p3) target bundleno = 6 (0x6), region = 89 }
 0x12f   :  { %986 = vsyncpa [#allocation3], 1 }
 0x130   :  { %988 = vsyncpa [#allocation3 + $0x1], 1 }
 0x131   :  { %989 = vsyncpa [#allocation6], 1 }
 0x132   :  { %990 = vsyncpa [#allocation4], 1 }
 0x133   :  { %992 = vsyncpa [#allocation4 + $0x1], 1 }

</bundles_post_ra>
